<compile_context>
chip_gen: v5e
topology: v5e:2x2
jax: 0.10.0
libtpu: 0.0.40
codegen_flags: <defaults>
</compile_context>

<pallas_src>
import jax
import jax.numpy as jnp
from jax.experimental import pallas as pl
from jax.experimental.pallas import tpu as pltpu

_LANES = 128
_TILE_ROWS = 1024            # (1024, 128) f32 tile = 512 KiB per buffer
_SMALL_LIMIT = 1 << 19       # <= 512K elements: whole-array VMEM, gridless


def _hardsigmoid_kernel(x_ref, o_ref):
    x = x_ref[...]
    out_dtype = o_ref.dtype
    # v5e has no bf16 VPU ALU path: do the elementwise math in f32 and cast
    # back on store.  For f32 inputs this is a no-op.
    if x.dtype != jnp.float32:
        x = x.astype(jnp.float32)
    # PyTorch Hardsigmoid: clamp(x/6 + 1/2, 0, 1)
    y = jnp.clip(x * (1.0 / 6.0) + 0.5, 0.0, 1.0)
    o_ref[...] = y.astype(out_dtype)


def _hardsigmoid_impl(x):
    orig_shape = x.shape
    n = x.size

    if n <= _SMALL_LIMIT:
        # Lane-dense (1, N) view: long axis on the lane dimension, no padding,
        # no slicing, single gridless pallas_call with whole-array VMEM blocks.
        x2d = x.reshape(1, n)
        out2d = pl.pallas_call(
            _hardsigmoid_kernel,
            out_shape=jax.ShapeDtypeStruct(x2d.shape, x2d.dtype),
            in_specs=[pl.BlockSpec(memory_space=pltpu.MemorySpace.VMEM)],
            out_specs=pl.BlockSpec(memory_space=pltpu.MemorySpace.VMEM),
        )(x2d)
        return out2d.reshape(orig_shape)

    # Large-tensor path (never hit by this module's (1,120,1,1) input):
    # tiled (1024, 128) grid, 'parallel' so v7x's two TensorCores share it and
    # per-buffer footprint stays far below the 64 MiB VMEM of v7x.
    tile_elems = _TILE_ROWS * _LANES
    pad = (-n) % tile_elems
    flat = x.reshape(-1)
    if pad:
        flat = jnp.pad(flat, (0, pad))
    rows = flat.size // _LANES
    x2d = flat.reshape(rows, _LANES)

    out2d = pl.pallas_call(
        _hardsigmoid_kernel,
        out_shape=jax.ShapeDtypeStruct(x2d.shape, x2d.dtype),
        grid=(rows // _TILE_ROWS,),
        in_specs=[pl.BlockSpec((_TILE_ROWS, _LANES), lambda i: (i, 0))],
        out_specs=pl.BlockSpec((_TILE_ROWS, _LANES), lambda i: (i, 0)),
        compiler_params=pltpu.CompilerParams(
            dimension_semantics=("parallel",)),
    )(x2d)
    return out2d.reshape(-1)[:n].reshape(orig_shape)


hardsigmoid_pallas = jax.jit(_hardsigmoid_impl)


if __name__ == "__main__":
    key = jax.random.PRNGKey(0)
    # Matches the module's input: torch.randn([1, 120, 1, 1])
    x67 = jax.random.normal(key, (1, 120, 1, 1), dtype=jnp.float32)

    x68 = hardsigmoid_pallas(x67)
    jax.block_until_ready(x68)

    # sanity check against pure-JAX reference of PyTorch Hardsigmoid
    ref = jnp.clip(x67 / 6.0 + 0.5, 0.0, 1.0)
    assert x68.shape == (1, 120, 1, 1)
    assert x68.dtype == x67.dtype
    assert jnp.allclose(x68, ref, atol=1e-6), "mismatch vs reference"

    print("KERNEL_OK")
</pallas_src>

<mosaic_0001>
module attributes {stable_mosaic.version = 11 : i64} {
  func.func @_hardsigmoid_kernel(%arg0: memref<1x120xf32, #tpu.memory_space<vmem>>, %arg1: memref<1x120xf32, #tpu.memory_space<vmem>>) attributes {dimension_semantics = [], scalar_prefetch = 0 : i64, scratch_operands = 0 : i64, tpu.core_type = #tpu.core_type<tc>} {
    %c0 = arith.constant 0 : index
    %c0_0 = arith.constant 0 : index
    %0 = vector.load %arg0[%c0, %c0_0] : memref<1x120xf32, #tpu.memory_space<vmem>>, vector<1x120xf32>
    %cst = arith.constant 0.166666672 : f32
    %1 = vector.broadcast %cst : f32 to vector<1x120xf32>
    %2 = arith.mulf %0, %1 : vector<1x120xf32>
    %cst_1 = arith.constant 5.000000e-01 : f32
    %3 = vector.broadcast %cst_1 : f32 to vector<1x120xf32>
    %4 = arith.addf %2, %3 : vector<1x120xf32>
    %cst_2 = arith.constant 0.000000e+00 : f32
    %cst_3 = arith.constant 1.000000e+00 : f32
    %5 = vector.broadcast %cst_2 : f32 to vector<1x120xf32>
    %6 = arith.maximumf %5, %4 : vector<1x120xf32>
    %7 = vector.broadcast %cst_3 : f32 to vector<1x120xf32>
    %8 = arith.minimumf %7, %6 : vector<1x120xf32>
    %c0_4 = arith.constant 0 : index
    %c0_5 = arith.constant 0 : index
    %9 = vector.load %arg1[%c0_4, %c0_5] : memref<1x120xf32, #tpu.memory_space<vmem>>, vector<1x120xf32>
    tpu.vector_store %arg1[%c0_4, %c0_5], %8 {strides = array<i32>} : memref<1x120xf32, #tpu.memory_space<vmem>>, vector<1x120xf32>,
    return
  }
}

</mosaic_0001>

<bundles_post_ra>
// kernel: _hardsigmoid_impl.1
= control target key start
LH: loop header
LB: loop body
LE: loop exit
PB: predicated region body
PF: predicated region fallthrough
CT: control target
= control target key end

     0   :  { %6 = vsyncpa [#allocation3], 0  ;;  %s119_s0 = inlined_call_operand.hbm [shape: f32[1,120], index: 0, kind: input, shape index: {}]   ;;  %s120_s1 = inlined_call_operand.hbm [shape: f32[1,120], index: 1, kind: output, shape index: {}]  }
   0x1   :  { %7 = vsyncpa [#allocation4], 0  ;;  %s13_s8 = sshll.u32 %s119_s0, 4  ;;  %s101_s9 = smov [#allocation2]   ;;  %s14_s8 = int_to_ptr.hbm [resolvable:$true] %s13_s8 }
   0x2   :  { %s15_s10 = sshll.u32 %s101_s9, 4  ;;  %s16_s10 = int_to_ptr.vmem [resolvable:$true] %s15_s10 }
   0x3   :  { %18 = dma.hbm_to_vmem [thread:$0]  %s14_s8, 16, %s16_s10, [#allocation3]  }
   0x4   :  { %97 = dma.done.wait [#allocation3], 16  }
   0x5   :  { %98 = vsyncadd [#allocation3], 4294967280  ;;  %v23_v0 = vld [vmem:[#allocation2] sm:$0x1]  ;;  %s102_s11 = smov [#allocation5]   ;;  %s37_s15 = sshll.u32 %s120_s1, 4  ;;  %s38_s15 = int_to_ptr.hbm [resolvable:$true] %s37_s15 }
   0x6   :  { %v24_v1 = vmul.f32 0.16666667, %v23_v0  ;;  %s35_s12 = sshll.u32 %s102_s11, 4  ;;  %vm28_vm0 = vcmask 974848   ;;  %s36_s12 = int_to_ptr.vmem [resolvable:$true] %s35_s12 }
   0x8   :  { %v25_v2 = vadd.f32 0.5, %v24_v1 }
   0xa   :  { %v26_v3 = vmax.f32 %v25_v2, 0.0 }
   0xc   :  { %v27_v4 = vmin.f32 %v26_v3, 1.0 }
   0xe   :  { %29 = vst.msk [vmem:[#allocation5] sm:$0x1] %vm28_vm0, %v27_v4 }
   0xf   :  { %40 = dma.vmem_to_hbm [thread:$0]  %s36_s12, 16, %s38_s15, [#allocation4]  }
  0x10   :  { %99 = dma.done.wait [#allocation4], 16  }
  0x11   :  { %100 = vsyncadd [#allocation4], 4294967280 }
  0x12   :  { %45 = vsyncpa [#allocation3], 1 }
  0x13   :  { %46 = vsyncpa [#allocation4], 1 }

</bundles_post_ra>
